<compile_context>
chip_gen: v7x
topology: tpu7x:2x2x1
jax: 0.10.0
libtpu: 0.0.40
codegen_flags: <defaults>
</compile_context>

<pallas_src>
import jax
import jax.numpy as jnp
from jax import lax
from jax.experimental import pallas as pl
from jax.experimental.pallas import tpu as pltpu

CLAMP_MIN = 1e-12
CLAMP_MAX = 1e12


def _round_up(a: int, m: int) -> int:
    return ((a + m - 1) // m) * m


def _center_loss_kernel(x_ref, c_ref, out_ref):
    # x_ref, c_ref: (tm, d) f32 -- features and their matched centers.
    diff = x_ref[...] - c_ref[...]                       # VPU elementwise
    dist = jnp.sum(diff * diff, axis=1, keepdims=True)   # (tm, 1) lane reduce
    out_ref[...] = jnp.clip(dist, CLAMP_MIN, CLAMP_MAX)  # single write, no RMW


def center_loss(x, labels, centers, *, tm=None,
                vmem_budget_bytes=24 * 1024 * 1024):
    """x: (b, d), labels: (b,) int, centers: (C, d) -> scalar f32 loss."""
    b, d = x.shape
    num_classes, d2 = centers.shape
    assert d == d2, "feature dims of x and centers must match"

    x = x.astype(jnp.float32)
    labels = labels.astype(jnp.int32)

    # The only centers HBM traffic: the b matched rows (~C x less than the gram
    # formulation at C=200..10k).
    c_sel = jnp.take(centers.astype(jnp.float32), labels, axis=0)    # (b, d)

    # --- batch tiling (sublane axis) ------------------------------------
    b8 = _round_up(b, 8)
    if tm is None:
        # 2 f32 inputs, double-buffered: 2 * 2 * tm * d * 4 bytes per step.
        tm = max(8, (vmem_budget_bytes // (16 * d)) // 8 * 8)
    tm = max(8, (tm // 8) * 8)          # enforce (8,128)-rule on the sublane dim
    tm = min(tm, b8)
    # Prefer >= 2 batch tiles so the "parallel" axis can shard across v7x's
    # two TensorCores (neutral when HBM-bound, free upside when not).
    if tm >= b8 and b8 >= 16 and b8 % 16 == 0:
        tm = b8 // 2
    b_pad = _round_up(b, tm)

    if b_pad != b:
        pad = b_pad - b
        x_p = jnp.pad(x, ((0, pad), (0, 0)))
        c_p = jnp.pad(c_sel, ((0, pad), (0, 0)))
    else:
        x_p, c_p = x, c_sel

    grid = (b_pad // tm,)

    per_row = pl.pallas_call(
        _center_loss_kernel,
        out_shape=jax.ShapeDtypeStruct((b_pad, 1), jnp.float32),
        grid_spec=pltpu.PrefetchScalarGridSpec(
            num_scalar_prefetch=0,
            grid=grid,
            in_specs=[
                pl.BlockSpec((tm, d), lambda i: (i, 0)),   # x rows
                pl.BlockSpec((tm, d), lambda i: (i, 0)),   # matched centers
            ],
            out_specs=pl.BlockSpec((tm, 1), lambda i: (i, 0)),
        ),
        compiler_params=pltpu.CompilerParams(
            dimension_semantics=("parallel",)),
    )(x_p, c_p)

    # Padded rows are simply never read; masked-out entries are analytic.
    matched_sum = jnp.sum(per_row[:b, 0])
    masked_out = jnp.float32(b) * jnp.float32(num_classes - 1) * jnp.float32(CLAMP_MIN)
    return (matched_sum + masked_out) / jnp.float32(b)


def _reference(x, labels, centers):
    # Pure-JAX transcription of the PyTorch forward.
    b = x.shape[0]
    num_classes = centers.shape[0]
    x = x.astype(jnp.float32)
    centers = centers.astype(jnp.float32)
    distmat = (
        jnp.sum(x * x, axis=1, keepdims=True)
        + jnp.sum(centers * centers, axis=1)[None, :]
        - 2.0 * jnp.matmul(x, centers.T, precision=lax.Precision.HIGHEST)
    )
    mask = labels[:, None] == jnp.arange(num_classes, dtype=labels.dtype)[None, :]
    dist = distmat * mask.astype(distmat.dtype)
    return jnp.clip(dist, CLAMP_MIN, CLAMP_MAX).sum() / b


if __name__ == "__main__":
    # Small shapes consistent with CenterLoss(num_classes, feat_dim)(x, labels).
    batch, feat_dim, num_classes = 24, 48, 200

    key = jax.random.PRNGKey(0)
    kx, kc, kl = jax.random.split(key, 3)
    x = jax.random.normal(kx, (batch, feat_dim), dtype=jnp.float32)
    centers = jax.random.normal(kc, (num_classes, feat_dim), dtype=jnp.float32)
    labels = jax.random.randint(kl, (batch,), 0, num_classes, dtype=jnp.int32)

    loss = center_loss(x, labels, centers)
    jax.block_until_ready(loss)

    ref = _reference(x, labels, centers)
    assert jnp.allclose(loss, ref, rtol=1e-4, atol=1e-5), (loss, ref)

    # Exercise the multi-tile / padded-batch path as well.
    loss2 = center_loss(x, labels, centers, tm=16)
    jax.block_until_ready(loss2)
    assert jnp.allclose(loss2, ref, rtol=1e-4, atol=1e-5), (loss2, ref)

    print("KERNEL_OK")
</pallas_src>

<mosaic_0001>
module attributes {stable_mosaic.version = 11 : i64} {
  func.func @_center_loss_kernel(%arg0: i32, %arg1: memref<24x48xf32, #tpu.memory_space<vmem>>, %arg2: memref<24x48xf32, #tpu.memory_space<vmem>>, %arg3: memref<24x1xf32, #tpu.memory_space<vmem>>) attributes {dimension_semantics = [#tpu.dimension_semantics<parallel>], iteration_bounds = array<i64: 1>, scalar_prefetch = 0 : i64, scratch_operands = 0 : i64, tpu.core_type = #tpu.core_type<tc>, window_params = [{transform_indices = @transform_0, window_bounds = array<i64: 24, 48>}, {transform_indices = @transform_1, window_bounds = array<i64: 24, 48>}, {transform_indices = @transform_2, window_bounds = array<i64: 24, 1>}]} {
    %c0 = arith.constant 0 : index
    %c0_0 = arith.constant 0 : index
    %0 = vector.load %arg1[%c0, %c0_0] : memref<24x48xf32, #tpu.memory_space<vmem>>, vector<24x48xf32>
    %c0_1 = arith.constant 0 : index
    %c0_2 = arith.constant 0 : index
    %1 = vector.load %arg2[%c0_1, %c0_2] : memref<24x48xf32, #tpu.memory_space<vmem>>, vector<24x48xf32>
    %2 = arith.subf %0, %1 : vector<24x48xf32>
    %3 = arith.mulf %2, %2 : vector<24x48xf32>
    %cst = arith.constant dense<0.000000e+00> : vector<24xf32>
    %4 = vector.multi_reduction <add>, %3, %cst [1] : vector<24x48xf32> to vector<24xf32>
    %5 = vector.shape_cast %4 : vector<24xf32> to vector<24x1xf32>
    %cst_3 = arith.constant 9.99999996E-13 : f32
    %cst_4 = arith.constant 9.99999995E+11 : f32
    %6 = vector.broadcast %cst_3 : f32 to vector<24x1xf32>
    %7 = arith.maximumf %6, %5 : vector<24x1xf32>
    %8 = vector.broadcast %cst_4 : f32 to vector<24x1xf32>
    %9 = arith.minimumf %8, %7 : vector<24x1xf32>
    %c0_5 = arith.constant 0 : index
    %c0_6 = arith.constant 0 : index
    %10 = vector.load %arg3[%c0_5, %c0_6] : memref<24x1xf32, #tpu.memory_space<vmem>>, vector<24x1xf32>
    tpu.vector_store %arg3[%c0_5, %c0_6], %9 {strides = array<i32>} : memref<24x1xf32, #tpu.memory_space<vmem>>, vector<24x1xf32>,
    return
  }
  func.func @transform_0(%arg0: i32) -> (i32, i32) {
    %c0_i32 = arith.constant 0 : i32
    %c0_i32_0 = arith.constant 0 : i32
    return %arg0, %c0_i32 : i32, i32
  }
  func.func @transform_1(%arg0: i32) -> (i32, i32) {
    %c0_i32 = arith.constant 0 : i32
    %c0_i32_0 = arith.constant 0 : i32
    return %arg0, %c0_i32 : i32, i32
  }
  func.func @transform_2(%arg0: i32) -> (i32, i32) {
    %c0_i32 = arith.constant 0 : i32
    %c0_i32_0 = arith.constant 0 : i32
    return %arg0, %c0_i32 : i32, i32
  }
}

</mosaic_0001>

<bundles_post_ra>
// kernel: tpu_custom_call.1
= control target key start
LH: loop header
LB: loop body
LE: loop exit
PB: predicated region body
PF: predicated region fallthrough
CT: control target
= control target key end

     0   :  { %7 = vsyncpa [#allocation3], 0  ;;  %s181_s0 = inlined_call_operand.hbm [shape: f32[24,48], index: 0, kind: input, shape index: {}]   ;;  %s182_s1 = inlined_call_operand.hbm [shape: f32[24,48], index: 1, kind: input, shape index: {}]   ;;  %s183_s2 = inlined_call_operand.vmem [shape: f32[24,1], index: 2, kind: output, shape index: {}]  }
   0x1   :  { %8 = vsyncpa [#allocation5], 0  ;;  %s129_s9 = smov [#allocation2]   ;;  %s81_s13 = scalar_lea.hbm %s181_s0, 384 }
   0x2   :  { %s14_s10 = sshll.u32 %s129_s9, 4  ;;  %p82_p0 = scmp.ne.s32.totalorder %s181_s0, %s81_s13  ;;  %s15_s10 = int_to_ptr.vmem [resolvable:$true] %s14_s10 }
   0x3   :  { %p85_p1 = scmp.lt.u32.totalorder %s81_s13, %s181_s0 }
   0x5   :  { %p87_p2 = pnand %p85_p1, %p82_p0 }
   0x7   :  { %90 = shalt.err (!%p87_p2)
}
   0x8   :  { %s91_s18 = scalar_lea.vmem %s15_s10, 384  ;;  %p96_p4 = scmp.lt.s32.totalorder %s15_s10, %s15_s10 }
   0x9   :  { %p92_p3 = scmp.ne.s32.totalorder %s15_s10, %s91_s18  ;;  %p97_p5 = scmp.lt.s32.totalorder %s91_s18, %s91_s18 }
   0xb   :  { %p98_p6 = por %p97_p5, %p96_p4 }
   0xd   :  { %p99_p7 = pnand %p98_p6, %p92_p3 }
   0xf   :  { %102 = shalt.err (!%p99_p7)
}
  0x10   :  { %s130_s19 = smov 128   ;;  %s131_s20 = smov 8  }
  0x11   :  { %20 = dma.hbm_to_vmem [thread:$0]  %s181_s0, 384, %s15_s10, [#allocation3], %s130_s19, %s130_s19, %s131_s20  }
  0x12   :  { %s132_s23 = smov [#allocation4]   ;;  %s103_s27 = scalar_lea.hbm %s182_s1, 384 }
  0x13   :  { %s26_s24 = sshll.u32 %s132_s23, 4  ;;  %p104_p8 = scmp.ne.s32.totalorder %s182_s1, %s103_s27  ;;  %s27_s24 = int_to_ptr.vmem [resolvable:$true] %s26_s24 }
  0x14   :  { %p107_p9 = scmp.lt.u32.totalorder %s103_s27, %s182_s1 }
  0x16   :  { %p109_p10 = pnand %p107_p9, %p104_p8 }
  0x18   :  { %112 = shalt.err (!%p109_p10)
}
  0x19   :  { %s113_s4 = scalar_lea.vmem %s27_s24, 384  ;;  %p118_p12 = scmp.lt.s32.totalorder %s27_s24, %s27_s24 }
  0x1a   :  { %p114_p11 = scmp.ne.s32.totalorder %s27_s24, %s113_s4  ;;  %p119_p13 = scmp.lt.s32.totalorder %s113_s4, %s113_s4 }
  0x1c   :  { %p120_p0 = por %p119_p13, %p118_p12 }
  0x1e   :  { %p121_p1 = pnand %p120_p0, %p114_p11 }
  0x20   :  { %124 = shalt.err (!%p121_p1)
}
  0x21   :  { %32 = dma.hbm_to_vmem [thread:$0]  %s182_s1, 384, %s27_s24, [#allocation5], %s130_s19, %s130_s19, %s131_s20  }
  0x22   :  { %125 = dma.done.wait [#allocation3], 384  }
  0x23   :  { %126 = vsyncadd [#allocation3], 4294966912 }
  0x24   :  { %127 = dma.done.wait [#allocation5], 384  }
  0x25   :  { %128 = vsyncadd [#allocation5], 4294966912  ;;  %v39_v0 = vld [vmem:[#allocation2] sm:$0xff]  ;;  %v42_v1 = vld [vmem:[#allocation4] sm:$0xff]  ;;  %vm51_vm0 = vcmask 392192   ;;  %vm67_vm1 = vcmask 7168  }
  0x26   :  { %v41_v2 = vld [vmem:[#allocation2 + $0x10] sm:$0xff]  ;;  %v45_v3 = vsub.f32 %v39_v0, %v42_v1  ;;  %v44_v4 = vld [vmem:[#allocation4 + $0x10] sm:$0xff]  ;;  %v43_v6 = vld [vmem:[#allocation4 + $0x8] sm:$0xff] }
  0x27   :  { %v40_v5 = vld [vmem:[#allocation2 + $0x8] sm:$0xff]  ;;  %v47_v7 = vsub.f32 %v41_v2, %v44_v4 }
  0x28   :  { %v46_v8 = vsub.f32 %v40_v5, %v43_v6  ;;  %v48_v9 = vmul.f32 %v45_v3, %v45_v3 }
  0x29   :  { %v50_v10 = vmul.f32 %v47_v7, %v47_v7 }
  0x2a   :  { %v49_v11 = vmul.f32 %v46_v8, %v46_v8  ;;  %v52_v12 = vsel %vm51_vm0, %v48_v9, 0.0 }
  0x2b   :  { %53 = vadd.xlane.f32.xlu0 %v52_v12  ;;  %v58_v13 = vsel %vm51_vm0, %v50_v10, 0.0 }
  0x2c   :  { %59 = vadd.xlane.f32.xlu1 %v58_v13  ;;  %v55_v14 = vsel %vm51_vm0, %v49_v11, 0.0 }
  0x2f   :  { %56 = vadd.xlane.f32.xlu0 %v55_v14 }
  0xb8   :  { %v54_v15 = vpop.xlane.xlu0 %53 }
  0xb9   :  { %v61_v16 = vmax.f32 %v54_v15, 1e-12  ;;  %v60_v17 = vpop.xlane.xlu1 %59 }
  0xba   :  { %v63_v18 = vmax.f32 %v60_v17, 1e-12 }
  0xbb   :  { %v64_v19 = vmin.f32 %v61_v16, 1e+12 }
  0xbc   :  { %v66_v20 = vmin.f32 %v63_v18, 1e+12  ;;  %v57_v21 = vpop.xlane.xlu0 %56 }
  0xbd   :  { %68 = vst.msk [vmem:[%s183_s2] sm:$0xff] %vm67_vm1, %v64_v19  ;;  %v62_v22 = vmax.f32 %v57_v21, 1e-12 }
  0xbe   :  { %70 = vst.msk [vmem:[%s183_s2 + $0x10] sm:$0xff] %vm67_vm1, %v66_v20 }
  0xbf   :  { %v65_v23 = vmin.f32 %v62_v22, 1e+12 }
  0xc1   :  { %69 = vst.msk [vmem:[%s183_s2 + $0x8] sm:$0xff] %vm67_vm1, %v65_v23 }
  0xc2   :  { %75 = vsyncpa [#allocation3], 1 }
  0xc3   :  { %76 = vsyncpa [#allocation5], 1 }

</bundles_post_ra>
